<compile_context>
chip_gen: v5e
topology: v5e:2x2
jax: 0.10.0
libtpu: 0.0.40
codegen_flags: <defaults>
</compile_context>

<pallas_src>
import functools

import jax
import jax.numpy as jnp
from jax.experimental import pallas as pl
from jax.experimental.pallas import tpu as pltpu


def _softplus(x):
    # numerically stable softplus: max(x, 0) + log(1 + exp(-|x|))
    return jnp.maximum(x, 0.0) + jnp.log(1.0 + jnp.exp(-jnp.abs(x)))


def _focal_loss_kernel(x0_ref, x1_ref, t_ref, out_ref, acc_loss, acc_w, *,
                       gamma, alpha):
    i = pl.program_id(0)

    @pl.when(i == 0)
    def _():
        acc_loss[...] = jnp.zeros_like(acc_loss)
        acc_w[...] = jnp.zeros_like(acc_w)

    x0 = x0_ref[...].astype(jnp.float32)      # (TM, 128)  class-0 logits
    x1 = x1_ref[...].astype(jnp.float32)      # (TM, 128)  class-1 logits
    t = t_ref[...]                            # (TM, 128)  int32, -1 = ignore

    d = x1 - x0
    # 2-class log-softmax of each class via log-sigmoid of the signed diff.
    logp0 = -_softplus(d)                     # log softmax(x)[class 0]
    logp1 = -_softplus(-d)                    # log softmax(x)[class 1]

    if gamma == 0:
        # (1 - p)**0 == 1  -> probabilities are not needed at all.
        logits0 = logp0
        logits1 = logp1
    else:
        p0 = jax.nn.sigmoid(-d)               # softmax prob of class 0
        p1 = jax.nn.sigmoid(d)                # softmax prob of class 1

        def _pow(b):
            if isinstance(gamma, int) and 0 < gamma <= 4:
                r = b
                for _ in range(gamma - 1):
                    r = r * b
                return r
            return b ** gamma

        logits0 = _pow(p1) * logp0            # (1 - p0)**gamma * log p0
        logits1 = _pow(p0) * logp1            # (1 - p1)**gamma * log p1

    valid = t != -1                           # ignore_index handling
    sel1 = t == 1
    w0 = jnp.float32(alpha)
    w1 = jnp.float32(1.0 - alpha)

    wt = jnp.where(valid, jnp.where(sel1, w1, w0), 0.0)   # weight[target] or 0
    lt = jnp.where(sel1, logits1, logits0)                # logits[., target]

    # pure elementwise accumulation; single reduce deferred to the last step
    acc_loss[...] += -wt * lt
    acc_w[...] += wt

    @pl.when(i == pl.num_programs(0) - 1)
    def _():
        total_loss = jnp.sum(acc_loss[...])
        total_w = jnp.sum(acc_w[...])
        # weighted mean (PyTorch nll_loss reduction='mean' with weights)
        out_ref[...] = (total_loss / total_w)[None, None]


def focal_loss_pallas(x_nchw, target, alpha=0.05, gamma=0, *, tile_rows=512):
    """x_nchw: (N, 2, H, W) float; target: (N, H, W) int in {-1, 0, 1}."""
    N, C, H, W = x_nchw.shape
    assert C == 2, "FocalLoss module is a binary (C=2) loss"
    LANES = 128
    total = N * H * W

    # Class planes are contiguous in NCHW: no transpose, no dtype cast here.
    x0 = x_nchw[:, 0].reshape(total)
    x1 = x_nchw[:, 1].reshape(total)
    t = target.reshape(total).astype(jnp.int32)

    # Lane-dense layout: (rows, 128). Tile rows must be a multiple of 8.
    rows = pl.cdiv(total, LANES)
    tm = max(8, min(tile_rows, pl.cdiv(rows, 8) * 8))
    tm = (tm // 8) * 8
    rows_pad = pl.cdiv(rows, tm) * tm

    pad = rows_pad * LANES - total
    if pad:
        x0 = jnp.pad(x0, (0, pad))
        x1 = jnp.pad(x1, (0, pad))
        # padded elements get target = -1 -> ignored (zero contribution)
        t = jnp.pad(t, (0, pad), constant_values=-1)

    x0 = x0.reshape(rows_pad, LANES)
    x1 = x1.reshape(rows_pad, LANES)
    t = t.reshape(rows_pad, LANES)

    grid = (rows_pad // tm,)
    kernel = functools.partial(_focal_loss_kernel, gamma=gamma, alpha=float(alpha))

    out = pl.pallas_call(
        kernel,
        out_shape=jax.ShapeDtypeStruct((1, 1), jnp.float32),
        grid_spec=pltpu.PrefetchScalarGridSpec(
            num_scalar_prefetch=0,
            grid=grid,
            in_specs=[
                pl.BlockSpec((tm, LANES), lambda i: (i, 0)),   # class-0 plane
                pl.BlockSpec((tm, LANES), lambda i: (i, 0)),   # class-1 plane
                pl.BlockSpec((tm, LANES), lambda i: (i, 0)),   # targets
            ],
            out_specs=pl.BlockSpec((1, 1), lambda i: (0, 0)),
            scratch_shapes=[
                pltpu.VMEM((tm, LANES), jnp.float32),  # weighted-loss partials
                pltpu.VMEM((tm, LANES), jnp.float32),  # weight partials
            ],
        ),
        compiler_params=pltpu.CompilerParams(
            dimension_semantics=("arbitrary",),   # shared accumulator -> serial
            vmem_limit_bytes=32 * 1024 * 1024,    # safe on v5e/v6e/v7x
        ),
    )(x0, x1, t)
    return out[0, 0]


def focal_loss_ref(x_nchw, target, alpha=0.05, gamma=0):
    """Pure-JAX reference matching the PyTorch module."""
    p = jax.nn.softmax(x_nchw, axis=1)
    logp = jnp.log(p)
    logits = (1.0 - p) ** gamma * logp                      # (N, C, H, W)
    w = jnp.array([alpha, 1.0 - alpha], dtype=jnp.float32)
    valid = target != -1
    tsafe = jnp.where(valid, target, 0)
    gathered = jnp.take_along_axis(logits, tsafe[:, None, :, :], axis=1)[:, 0]
    wsel = w[tsafe] * valid.astype(jnp.float32)
    return jnp.sum(-wsel * gathered) / jnp.sum(wsel)


if __name__ == "__main__":
    key = jax.random.PRNGKey(0)
    kx, kt = jax.random.split(key)

    N, C, H, W = 2, 2, 16, 16
    x = jax.random.normal(kx, (N, C, H, W), dtype=jnp.float32)
    # targets in {-1, 0, 1}; -1 exercises ignore_index
    target = jax.random.randint(kt, (N, H, W), -1, C)

    loss = focal_loss_pallas(x, target, alpha=0.05, gamma=0)
    loss = jax.block_until_ready(loss)

    ref = focal_loss_ref(x, target, alpha=0.05, gamma=0)
    assert jnp.allclose(loss, ref, rtol=1e-5, atol=1e-5), (loss, ref)

    # also exercise the gamma != 0 path (focal modulation via sigmoid probs)
    loss2 = jax.block_until_ready(focal_loss_pallas(x, target, alpha=0.25, gamma=2))
    ref2 = focal_loss_ref(x, target, alpha=0.25, gamma=2)
    assert jnp.allclose(loss2, ref2, rtol=1e-5, atol=1e-5), (loss2, ref2)

    print("KERNEL_OK")
</pallas_src>

<mosaic_0001>
module attributes {stable_mosaic.version = 11 : i64} {
  func.func @_focal_loss_kernel(%arg0: i32, %arg1: memref<8x128xf32, #tpu.memory_space<vmem>>, %arg2: memref<8x128xf32, #tpu.memory_space<vmem>>, %arg3: memref<8x128xi32, #tpu.memory_space<vmem>>, %arg4: memref<1x1xf32, #tpu.memory_space<vmem>>, %arg5: memref<8x128xf32, #tpu.memory_space<vmem>>, %arg6: memref<8x128xf32, #tpu.memory_space<vmem>>) attributes {dimension_semantics = [#tpu.dimension_semantics<arbitrary>], iteration_bounds = array<i64: 1>, scalar_prefetch = 0 : i64, scratch_operands = 2 : i64, tpu.core_type = #tpu.core_type<tc>, window_params = [{transform_indices = @transform_0, window_bounds = array<i64: 8, 128>}, {transform_indices = @transform_1, window_bounds = array<i64: 8, 128>}, {transform_indices = @transform_2, window_bounds = array<i64: 8, 128>}, {pipeline_mode = #tpu.pipeline_mode<synchronous>, transform_indices = @transform_3, window_bounds = array<i64: 1, 1>}]} {
    %c0_i32 = arith.constant 0 : i32
    %0 = arith.cmpi eq, %arg0, %c0_i32 : i32
    %1 = arith.extui %0 : i1 to i32
    %c0_i32_0 = arith.constant 0 : i32
    %2 = arith.cmpi ne, %1, %c0_i32_0 : i32
    scf.if %2 {
      %cst_28 = arith.constant 0.000000e+00 : f32
      %55 = vector.broadcast %cst_28 : f32 to vector<8x128xf32>
      %c0_29 = arith.constant 0 : index
      %c0_30 = arith.constant 0 : index
      %56 = vector.load %arg5[%c0_29, %c0_30] : memref<8x128xf32, #tpu.memory_space<vmem>>, vector<8x128xf32>
      tpu.vector_store %arg5[%c0_29, %c0_30], %55 {strides = array<i32>} : memref<8x128xf32, #tpu.memory_space<vmem>>, vector<8x128xf32>,
      %cst_31 = arith.constant 0.000000e+00 : f32
      %57 = vector.broadcast %cst_31 : f32 to vector<8x128xf32>
      %c0_32 = arith.constant 0 : index
      %c0_33 = arith.constant 0 : index
      %58 = vector.load %arg6[%c0_32, %c0_33] : memref<8x128xf32, #tpu.memory_space<vmem>>, vector<8x128xf32>
      tpu.vector_store %arg6[%c0_32, %c0_33], %57 {strides = array<i32>} : memref<8x128xf32, #tpu.memory_space<vmem>>, vector<8x128xf32>,
    } else {
    }
    %c0 = arith.constant 0 : index
    %c0_1 = arith.constant 0 : index
    %3 = vector.load %arg1[%c0, %c0_1] : memref<8x128xf32, #tpu.memory_space<vmem>>, vector<8x128xf32>
    %c0_2 = arith.constant 0 : index
    %c0_3 = arith.constant 0 : index
    %4 = vector.load %arg2[%c0_2, %c0_3] : memref<8x128xf32, #tpu.memory_space<vmem>>, vector<8x128xf32>
    %c0_4 = arith.constant 0 : index
    %c0_5 = arith.constant 0 : index
    %5 = vector.load %arg3[%c0_4, %c0_5] : memref<8x128xi32, #tpu.memory_space<vmem>>, vector<8x128xi32>
    %6 = arith.subf %4, %3 : vector<8x128xf32>
    %cst = arith.constant 0.000000e+00 : f32
    %7 = vector.broadcast %cst : f32 to vector<8x128xf32>
    %8 = arith.maximumf %6, %7 : vector<8x128xf32>
    %9 = math.absf %6 : vector<8x128xf32>
    %cst_6 = arith.constant 0.000000e+00 : f32
    %10 = vector.broadcast %cst_6 : f32 to vector<8x128xf32>
    %11 = arith.subf %10, %9 : vector<8x128xf32>
    %12 = math.exp %11 : vector<8x128xf32>
    %cst_7 = arith.constant 1.000000e+00 : f32
    %13 = vector.broadcast %cst_7 : f32 to vector<8x128xf32>
    %14 = arith.addf %13, %12 : vector<8x128xf32>
    %15 = math.log %14 : vector<8x128xf32>
    %16 = arith.addf %8, %15 : vector<8x128xf32>
    %cst_8 = arith.constant 0.000000e+00 : f32
    %17 = vector.broadcast %cst_8 : f32 to vector<8x128xf32>
    %18 = arith.subf %17, %16 : vector<8x128xf32>
    %cst_9 = arith.constant 0.000000e+00 : f32
    %19 = vector.broadcast %cst_9 : f32 to vector<8x128xf32>
    %20 = arith.subf %19, %6 : vector<8x128xf32>
    %cst_10 = arith.constant 0.000000e+00 : f32
    %21 = vector.broadcast %cst_10 : f32 to vector<8x128xf32>
    %22 = arith.maximumf %20, %21 : vector<8x128xf32>
    %23 = math.absf %20 : vector<8x128xf32>
    %cst_11 = arith.constant 0.000000e+00 : f32
    %24 = vector.broadcast %cst_11 : f32 to vector<8x128xf32>
    %25 = arith.subf %24, %23 : vector<8x128xf32>
    %26 = math.exp %25 : vector<8x128xf32>
    %cst_12 = arith.constant 1.000000e+00 : f32
    %27 = vector.broadcast %cst_12 : f32 to vector<8x128xf32>
    %28 = arith.addf %27, %26 : vector<8x128xf32>
    %29 = math.log %28 : vector<8x128xf32>
    %30 = arith.addf %22, %29 : vector<8x128xf32>
    %cst_13 = arith.constant 0.000000e+00 : f32
    %31 = vector.broadcast %cst_13 : f32 to vector<8x128xf32>
    %32 = arith.subf %31, %30 : vector<8x128xf32>
    %c-1_i32 = arith.constant -1 : i32
    %33 = vector.broadcast %c-1_i32 : i32 to vector<8x128xi32>
    %34 = arith.cmpi ne, %5, %33 : vector<8x128xi32>
    %c1_i32 = arith.constant 1 : i32
    %35 = vector.broadcast %c1_i32 : i32 to vector<8x128xi32>
    %36 = arith.cmpi eq, %5, %35 : vector<8x128xi32>
    %cst_14 = arith.constant 0.949999988 : f32
    %cst_15 = arith.constant 5.000000e-02 : f32
    %37 = vector.broadcast %cst_14 : f32 to vector<8x128xf32>
    %38 = vector.broadcast %cst_15 : f32 to vector<8x128xf32>
    %39 = arith.select %36, %37, %38 : vector<8x128xi1>, vector<8x128xf32>
    %cst_16 = arith.constant 0.000000e+00 : f32
    %40 = vector.broadcast %cst_16 : f32 to vector<8x128xf32>
    %41 = arith.select %34, %39, %40 : vector<8x128xi1>, vector<8x128xf32>
    %42 = arith.select %36, %32, %18 : vector<8x128xi1>, vector<8x128xf32>
    %c0_17 = arith.constant 0 : index
    %c0_18 = arith.constant 0 : index
    %43 = vector.load %arg5[%c0_17, %c0_18] : memref<8x128xf32, #tpu.memory_space<vmem>>, vector<8x128xf32>
    %cst_19 = arith.constant 0.000000e+00 : f32
    %44 = vector.broadcast %cst_19 : f32 to vector<8x128xf32>
    %45 = arith.subf %44, %41 : vector<8x128xf32>
    %46 = arith.mulf %45, %42 : vector<8x128xf32>
    %47 = arith.addf %43, %46 : vector<8x128xf32>
    %c0_20 = arith.constant 0 : index
    %c0_21 = arith.constant 0 : index
    %48 = vector.load %arg5[%c0_20, %c0_21] : memref<8x128xf32, #tpu.memory_space<vmem>>, vector<8x128xf32>
    tpu.vector_store %arg5[%c0_20, %c0_21], %47 {strides = array<i32>} : memref<8x128xf32, #tpu.memory_space<vmem>>, vector<8x128xf32>,
    %c0_22 = arith.constant 0 : index
    %c0_23 = arith.constant 0 : index
    %49 = vector.load %arg6[%c0_22, %c0_23] : memref<8x128xf32, #tpu.memory_space<vmem>>, vector<8x128xf32>
    %50 = arith.addf %49, %41 : vector<8x128xf32>
    %c0_24 = arith.constant 0 : index
    %c0_25 = arith.constant 0 : index
    %51 = vector.load %arg6[%c0_24, %c0_25] : memref<8x128xf32, #tpu.memory_space<vmem>>, vector<8x128xf32>
    tpu.vector_store %arg6[%c0_24, %c0_25], %50 {strides = array<i32>} : memref<8x128xf32, #tpu.memory_space<vmem>>, vector<8x128xf32>,
    %c0_i32_26 = arith.constant 0 : i32
    %52 = arith.cmpi eq, %arg0, %c0_i32_26 : i32
    %53 = arith.extui %52 : i1 to i32
    %c0_i32_27 = arith.constant 0 : i32
    %54 = arith.cmpi ne, %53, %c0_i32_27 : i32
    scf.if %54 {
      %c0_28 = arith.constant 0 : index
      %c0_29 = arith.constant 0 : index
      %55 = vector.load %arg5[%c0_28, %c0_29] : memref<8x128xf32, #tpu.memory_space<vmem>>, vector<8x128xf32>
      %56 = vector.shape_cast %55 : vector<8x128xf32> to vector<1x8x128xf32>
      %cst_30 = arith.constant dense<0.000000e+00> : vector<1xf32>
      %57 = vector.multi_reduction <add>, %56, %cst_30 [1, 2] : vector<1x8x128xf32> to vector<1xf32>
      %58 = vector.shape_cast %57 : vector<1xf32> to vector<1x1x1xf32>
      %59 = vector.extract %58[0, 0, 0] : f32 from vector<1x1x1xf32>
      %c0_31 = arith.constant 0 : index
      %c0_32 = arith.constant 0 : index
      %60 = vector.load %arg6[%c0_31, %c0_32] : memref<8x128xf32, #tpu.memory_space<vmem>>, vector<8x128xf32>
      %61 = vector.shape_cast %60 : vector<8x128xf32> to vector<1x8x128xf32>
      %cst_33 = arith.constant dense<0.000000e+00> : vector<1xf32>
      %62 = vector.multi_reduction <add>, %61, %cst_33 [1, 2] : vector<1x8x128xf32> to vector<1xf32>
      %63 = vector.shape_cast %62 : vector<1xf32> to vector<1x1x1xf32>
      %64 = vector.extract %63[0, 0, 0] : f32 from vector<1x1x1xf32>
      %65 = arith.divf %59, %64 : f32
      %66 = vector.broadcast %65 : f32 to vector<1x1xf32>
      %c0_34 = arith.constant 0 : index
      %c0_35 = arith.constant 0 : index
      %67 = vector.load %arg4[%c0_34, %c0_35] : memref<1x1xf32, #tpu.memory_space<vmem>>, vector<1x1xf32>
      tpu.vector_store %arg4[%c0_34, %c0_35], %66 {strides = array<i32>} : memref<1x1xf32, #tpu.memory_space<vmem>>, vector<1x1xf32>,
    } else {
    }
    return
  }
  func.func @transform_0(%arg0: i32) -> (i32, i32) {
    %c0_i32 = arith.constant 0 : i32
    %c0_i32_0 = arith.constant 0 : i32
    return %arg0, %c0_i32 : i32, i32
  }
  func.func @transform_1(%arg0: i32) -> (i32, i32) {
    %c0_i32 = arith.constant 0 : i32
    %c0_i32_0 = arith.constant 0 : i32
    return %arg0, %c0_i32 : i32, i32
  }
  func.func @transform_2(%arg0: i32) -> (i32, i32) {
    %c0_i32 = arith.constant 0 : i32
    %c0_i32_0 = arith.constant 0 : i32
    return %arg0, %c0_i32 : i32, i32
  }
  func.func @transform_3(%arg0: i32) -> (i32, i32) {
    %c0_i32 = arith.constant 0 : i32
    %c0_i32_0 = arith.constant 0 : i32
    %c0_i32_1 = arith.constant 0 : i32
    return %c0_i32, %c0_i32_0 : i32, i32
  }
}

</mosaic_0001>

<bundles_post_ra>
// kernel: tpu_custom_call.1
= control target key start
LH: loop header
LB: loop body
LE: loop exit
PB: predicated region body
PF: predicated region fallthrough
CT: control target
= control target key end

     0   :  { %8 = vsyncpa [#allocation5], 0  ;;  %s323_s0 = inlined_call_operand.hbm [shape: f32[8,128], index: 0, kind: input, shape index: {}]   ;;  %s324_s1 = inlined_call_operand.hbm [shape: f32[8,128], index: 1, kind: input, shape index: {}]   ;;  %s325_s2 = inlined_call_operand.hbm [shape: s32[8,128], index: 2, kind: input, shape index: {}]   ;;  %s326_s3 = inlined_call_operand.hbm [shape: f32[1,1], index: 3, kind: output, shape index: {}]  }
   0x1   :  { %9 = vsyncpa [#allocation8], 0  ;;  %s27_s14 = sshll.u32 %s324_s1, 4  ;;  %s28_s14 = int_to_ptr.hbm [resolvable:$true] %s27_s14 }
   0x2   :  { %10 = vsyncpa [#allocation6], 0  ;;  %s284_s15 = smov [#allocation7]   ;;  %s16_s19 = sshll.u32 %s323_s0, 4  ;;  %s17_s19 = int_to_ptr.hbm [resolvable:$true] %s16_s19 }
   0x3   :  { %s29_s16 = sshll.u32 %s284_s15, 4  ;;  %s285_s20 = smov [#allocation4]   ;;  %s30_s16 = int_to_ptr.vmem [resolvable:$true] %s29_s16 }
   0x4   :  { %32 = dma.hbm_to_vmem [thread:$0]  %s28_s14, 128, %s30_s16, [#allocation8]  }
   0x5   :  { %s18_s21 = sshll.u32 %s285_s20, 4  ;;  %s38_s24 = sshll.u32 %s325_s2, 4  ;;  %s19_s21 = int_to_ptr.vmem [resolvable:$true] %s18_s21  ;;  %s39_s24 = int_to_ptr.hbm [resolvable:$true] %s38_s24 }
   0x6   :  { %21 = dma.hbm_to_vmem [thread:$0]  %s17_s19, 128, %s19_s21, [#allocation5]  }
   0x7   :  { %s286_s1 = smov [#allocation9]  }
   0x8   :  { %s40_s25 = sshll.u32 %s286_s1, 4  ;;  %s41_s25 = int_to_ptr.vmem [resolvable:$true] %s40_s25 }
   0x9   :  { %43 = dma.hbm_to_vmem [thread:$0]  %s39_s24, 128, %s41_s25, [#allocation8]  }
   0xa   :  { %278 = dma.done.wait [#allocation5], 128  }
   0xb   :  { %279 = vsyncadd [#allocation5], 4294967168 }
   0xc   :  { %280 = dma.done.wait [#allocation8], 256  }
   0xd   :  { %281 = vsyncadd [#allocation8], 4294967040  ;;  %v62_v0 = vld [vmem:[#allocation4] sm:$0xff]  ;;  %v63_v1 = vld [vmem:[#allocation7] sm:$0xff]  ;;  %v287_v17 = vmov 0.05  }
   0xe   :  { %v65_v2 = vsub.f32 %v63_v1, %v62_v0  ;;  %v64_v13 = vld [vmem:[#allocation9] sm:$0xff]  ;;  %s288_s26 = smov [#allocation10]   ;;  %s150_s30 = sshll.u32 %s326_s3, 4  ;;  %vm141_vm6 = vcmask 0   ;;  %s151_s30 = int_to_ptr.hbm [resolvable:$true] %s150_s30 }
   0xf   :  { %vm88_vm0 = vcmp.eq.s32.totalorder %v64_v13, 1  ;;  %vm87_vm1 = vcmp.ne.s32.totalorder %v64_v13, 4294967295  ;;  %s148_s27 = sshll.u32 %s288_s26, 4  ;;  %s149_s27 = int_to_ptr.vmem [resolvable:$true] %s148_s27 }
  0x10   :  { %v67_v3 = vand.u32 2147483647, %v65_v2  ;;  %v76_v4 = vsub.f32 0.0, %v65_v2  ;;  %v66_v15 = vmax.f32 %v65_v2, 0.0  ;;  %v89_v18 = vsel %vm88_vm0, 0.95, %v287_v17 }
  0x11   :  { %v90_v24 = vsel %vm87_vm1, %v89_v18, 0.0 }
  0x12   :  { %v68_v5 = vsub.f32 0.0, %v67_v3  ;;  %v78_v6 = vand.u32 2147483647, %v76_v4  ;;  %v77_v20 = vmax.f32 %v76_v4, 0.0  ;;  %v93_v27 = vsub.f32 0.0, %v90_v24 }
  0x14   :  { %v69_v7 = vmul.f32 1.442695, %v68_v5  ;;  %v79_v8 = vsub.f32 0.0, %v78_v6 }
  0x16   :  { %172 = vpow2.f32 %v69_v7  ;;  %v80_v9 = vmul.f32 1.442695, %v79_v8 }
  0x18   :  { %174 = vpow2.f32 %v80_v9 }
  0x1c   :  { %v173_v10 = vpop.eup %172 }
  0x1d   :  { %v71_v11 = vadd.f32 1.0, %v173_v10 }
  0x1e   :  { %v175_v12 = vpop.eup %174 }
  0x1f   :  { %176 = vlog2.f32 %v71_v11  ;;  %v82_v14 = vadd.f32 1.0, %v175_v12 }
  0x21   :  { %178 = vlog2.f32 %v82_v14 }
  0x25   :  { %v177_v16 = vpop.eup %176 }
  0x26   :  { %v73_v19 = vmul.f32 0.6931472, %v177_v16 }
  0x27   :  { %v179_v21 = vpop.eup %178 }
  0x28   :  { %v74_v22 = vadd.f32 %v73_v19, %v66_v15  ;;  %v84_v23 = vmul.f32 0.6931472, %v179_v21 }
  0x2a   :  { %v75_v25 = vsub.f32 0.0, %v74_v22  ;;  %v85_v26 = vadd.f32 %v84_v23, %v77_v20 }
  0x2c   :  { %v86_v28 = vsub.f32 0.0, %v85_v26 }
  0x2e   :  { %v91_v29 = vsel %vm88_vm0, %v86_v28, %v75_v25 }
  0x2f   :  { %v94_v30 = vmul.f32 %v93_v27, %v91_v29 }
  0x31   :  { %104 = vadd.xlane.f32.xlu0 %v94_v30 }
  0x39   :  { %114 = vadd.xlane.f32.xlu0 %v90_v24 }
  0xa4   :  { %v105_v31 = vpop.xlane.xlu0 %104 }
  0xa5   :  { %v106_v32 = vrot.slane %v105_v31, 4 }
  0xa7   :  { %v107_v33 = vadd.f32 %v106_v32, %v105_v31 }
  0xa9   :  { %v108_v34 = vrot.slane %v107_v33, 2 }
  0xab   :  { %v109_v35 = vadd.f32 %v108_v34, %v107_v33 }
  0xac   :  { %v115_v36 = vpop.xlane.xlu0 %114 }
  0xad   :  { %v116_v37 = vrot.slane %v115_v36, 4  ;;  %v110_v38 = vrot.slane %v109_v35, 1 }
  0xaf   :  { %v117_v39 = vadd.f32 %v116_v37, %v115_v36  ;;  %v111_v40 = vadd.f32 %v110_v38, %v109_v35 }
  0xb1   :  { %v118_v41 = vrot.slane %v117_v39, 2  ;;  %161 = vpush %v111_v40 }
  0xb3   :  { %v119_v42 = vadd.f32 %v118_v41, %v117_v39 }
  0xb5   :  { %v120_v43 = vrot.slane %v119_v42, 1 }
  0xb7   :  { %v121_v44 = vadd.f32 %v120_v43, %v119_v42 }
  0xb9   :  { %163 = vpush %v121_v44 }
  0xe2   :  { %s162_s0 = spop %161 }
  0xea   :  { %s164_s2 = spop %163 }
  0xeb   :  { %v123_v45 = vstv %s164_s2 }
  0xec   :  { %180 = vrcp.f32 %v123_v45  ;;  %v135_v49 = vand.u32 2147483648, %v123_v45  ;;  %v133_v51 = vand.u32 2147483647, %v123_v45  ;;  %vm129_vm3 = vweird.f32 %v123_v45 }
  0xee   :  { %v136_v53 = vor.u32 1.1754944e-38, %v135_v49  ;;  %vm134_vm5 = vcmp.eq.f32.partialorder %v133_v51, 8.507059e+37 }
  0xf2   :  { %v181_v46 = vpop.eup %180 }
  0xf3   :  { %v125_v47 = vmul.f32 %v181_v46, %v123_v45  ;;  %vm130_vm2 = vweird.f32 %v181_v46 }
  0xf4   :  { %vm131_vm4 = vmor %vm129_vm3, %vm130_vm2 }
  0xf5   :  { %v126_v48 = vsub.f32 1.0, %v125_v47 }
  0xf7   :  { %v127_v50 = vmul.f32 %v181_v46, %v126_v48 }
  0xf9   :  { %v128_v52 = vadd.f32 %v181_v46, %v127_v50 }
  0xfb   :  { %v132_v54 = vsel %vm131_vm4, %v181_v46, %v128_v52 }
  0xfc   :  { %v137_v55 = vsel %vm134_vm5, %v136_v53, %v132_v54 }
  0xfd   :  { %165 = vpush %v137_v55 }
 0x12e   :  { %s166_s4 = spop %165 }
 0x12f   :  { %s139_s5 = smul.f32 %s166_s4, %s162_s0 }
 0x131   :  { %v140_v56 = vstv %s139_s5 }
 0x132   :  { %142 = vst.msk [vmem:[#allocation10] sm:$0x1] %vm141_vm6, %v140_v56 }
 0x133   :  { %153 = dma.vmem_to_hbm [thread:$0]  %s149_s27, 16, %s151_s30, [#allocation6]  }
 0x134   :  { %282 = dma.done.wait [#allocation6], 16  }
 0x135   :  { %283 = vsyncadd [#allocation6], 4294967280 }
 0x136   :  { %158 = vsyncpa [#allocation5], 1 }
 0x137   :  { %159 = vsyncpa [#allocation8], 1 }
 0x138   :  { %160 = vsyncpa [#allocation6], 1 }

</bundles_post_ra>
